<compile_context>
chip_gen: v6e
topology: v6e:2x2x1
jax: 0.10.0
libtpu: 0.0.40
codegen_flags: <defaults>
</compile_context>

<pallas_src>
import functools
import math

import jax
import jax.numpy as jnp
from jax.experimental import pallas as pl
from jax.experimental.pallas import tpu as pltpu


# ----------------------------------------------------------------------------
# helpers
# ----------------------------------------------------------------------------
def _choose_tile(dim, target, align, min_tile):
    """Pick a tile for `dim`.

    Returns (tile, padded_dim).  If dim <= target: a single full-dim block (no
    alignment constraint applies).  Otherwise prefer an `align`-multiple divisor of
    dim that is >= min_tile; if none exists, keep the tuned tile and pad `dim` up
    (never degrade to tiny tiles / whole-dim blocks).
    """
    if dim <= target:
        return dim, dim
    t = target - (target % align)
    floor = max(align, min_tile)
    c = t
    while c >= floor:
        if dim % c == 0:
            return c, dim
        c -= align
    return t, pl.cdiv(dim, t) * t


def _vmem_limit_bytes(block_bytes, scratch_bytes=0):
    """Scoped-VMEM request sized from double-buffered block bytes (+ headroom)."""
    est = 2 * block_bytes + scratch_bytes
    est = int(est * 1.5) + 4 * 1024 * 1024
    return max(16 * 1024 * 1024, min(est, 64 * 1024 * 1024))


# ----------------------------------------------------------------------------
# Linear  y = x @ W + b
# ----------------------------------------------------------------------------
def _linear_full_k_kernel(x_ref, w_ref, b_ref, o_ref):
    # Full-K strip: single MXU pass, no accumulator round-trip, no reduction axis.
    acc = jnp.dot(x_ref[...], w_ref[...], preferred_element_type=jnp.float32)
    o_ref[...] = (acc + b_ref[...].astype(jnp.float32)).astype(o_ref.dtype)


def _linear_tiled_k_kernel(x_ref, w_ref, b_ref, o_ref, acc_ref):
    k = pl.program_id(2)

    @pl.when(k == 0)
    def _():
        acc_ref[...] = jnp.zeros(acc_ref.shape, acc_ref.dtype)

    acc_ref[...] += jnp.dot(x_ref[...], w_ref[...],
                            preferred_element_type=jnp.float32)

    @pl.when(k == pl.num_programs(2) - 1)
    def _():
        o_ref[...] = (acc_ref[...] + b_ref[...].astype(jnp.float32)).astype(o_ref.dtype)


def pallas_linear(x2d, w, b, *, tm_target=512, tn_target=512, tk_target=512,
                  k_full_max=2048):
    """x2d: (M, K), w: (K, N), b: (N,) -> (M, N)."""
    M, K = x2d.shape
    Kw, N = w.shape
    assert Kw == K
    dtype = x2d.dtype
    itemsize = jnp.dtype(dtype).itemsize

    tm, Mp = _choose_tile(M, tm_target, 8, min_tile=128)
    tn, Np = _choose_tile(N, tn_target, 128, min_tile=128)

    x_p = x2d if Mp == M else jnp.pad(x2d, ((0, Mp - M), (0, 0)))
    w_p, b_p = w, b
    if Np != N:
        w_p = jnp.pad(w, ((0, 0), (0, Np - N)))
        b_p = jnp.pad(b, ((0, Np - N),))

    if K <= k_full_max:
        # K = n_embd comfortably fits a single VMEM strip on every generation.
        b2d = b_p.reshape(1, Np)
        grid = (Mp // tm, Np // tn)
        block_bytes = itemsize * (tm * K + K * tn + tn + tm * tn)
        out = pl.pallas_call(
            _linear_full_k_kernel,
            out_shape=jax.ShapeDtypeStruct((Mp, Np), dtype),
            grid=grid,
            in_specs=[pl.BlockSpec((tm, K), lambda i, j: (i, 0)),
                      pl.BlockSpec((K, tn), lambda i, j: (0, j)),
                      pl.BlockSpec((1, tn), lambda i, j: (0, j))],
            out_specs=pl.BlockSpec((tm, tn), lambda i, j: (i, j)),
            compiler_params=pltpu.CompilerParams(
                dimension_semantics=("parallel", "parallel"),
                vmem_limit_bytes=_vmem_limit_bytes(block_bytes),
            ),
        )(x_p, w_p, b2d)
    else:
        tk, Kp = _choose_tile(K, tk_target, 128, min_tile=256)
        if Kp != K:
            x_p = jnp.pad(x_p, ((0, 0), (0, Kp - K)))
            w_p = jnp.pad(w_p, ((0, Kp - K), (0, 0)))
        b2d = b_p.reshape(1, Np)
        grid = (Mp // tm, Np // tn, Kp // tk)
        block_bytes = itemsize * (tm * tk + tk * tn + tn + tm * tn)
        out = pl.pallas_call(
            _linear_tiled_k_kernel,
            out_shape=jax.ShapeDtypeStruct((Mp, Np), dtype),
            grid=grid,
            in_specs=[pl.BlockSpec((tm, tk), lambda i, j, k: (i, k)),
                      pl.BlockSpec((tk, tn), lambda i, j, k: (k, j)),
                      pl.BlockSpec((1, tn), lambda i, j, k: (0, j))],
            out_specs=pl.BlockSpec((tm, tn), lambda i, j, k: (i, j)),
            scratch_shapes=[pltpu.VMEM((tm, tn), jnp.float32)],
            compiler_params=pltpu.CompilerParams(
                dimension_semantics=("parallel", "parallel", "arbitrary"),
                vmem_limit_bytes=_vmem_limit_bytes(block_bytes,
                                                   scratch_bytes=tm * tn * 4),
            ),
        )(x_p, w_p, b2d)

    if Mp != M or Np != N:
        out = out[:M, :N]
    return out


# ----------------------------------------------------------------------------
# Flash-style causal attention over (B, T, C) activations (heads packed along C).
# ----------------------------------------------------------------------------
def _flash_attention_kernel(q_ref, k_ref, v_ref, o_ref,
                            qs_ref, m_ref, l_ref, acc_ref, *, n_head, scale):
    qi = pl.program_id(1)
    ki = pl.program_id(2)

    tq = q_ref.shape[1]
    tk = k_ref.shape[1]
    C = q_ref.shape[2]
    hs = C // n_head

    @pl.when(ki == 0)
    def _init():
        # q block is resident across the whole KV axis: fold 1/sqrt(hs) in ONCE.
        qs_ref[...] = (q_ref[0].astype(jnp.float32) * scale).astype(qs_ref.dtype)
        m_ref[...] = jnp.full(m_ref.shape, -jnp.inf, dtype=m_ref.dtype)
        l_ref[...] = jnp.zeros(l_ref.shape, l_ref.dtype)
        acc_ref[...] = jnp.zeros(acc_ref.shape, acc_ref.dtype)

    def attend(masked):
        k_all = k_ref[0]            # (tk, C)
        v_all = v_ref[0]            # (tk, C)
        if masked:                  # only the diagonal block pays for iota + select
            row = qi * tq + jax.lax.broadcasted_iota(jnp.int32, (tq, tk), 0)
            col = ki * tk + jax.lax.broadcasted_iota(jnp.int32, (tq, tk), 1)
            mask = col <= row
        for h in range(n_head):     # per-head direct stores -> bounded live ranges
            sl = slice(h * hs, (h + 1) * hs)
            qh = qs_ref[:, sl]      # pre-scaled
            kh = k_all[:, sl]
            vh = v_all[:, sl]

            # contract last axes: MXU consumes K natively, no XLU transpose
            s = jax.lax.dot_general(qh, kh, (((1,), (1,)), ((), ())),
                                    preferred_element_type=jnp.float32)   # (tq, tk)
            if masked:
                s = jnp.where(mask, s, -1e30)

            m_prev = m_ref[:, h:h + 1]                       # (tq, 1)
            m_new = jnp.maximum(m_prev, jnp.max(s, axis=-1, keepdims=True))
            alpha = jnp.exp(m_prev - m_new)
            p = jnp.exp(s - m_new)

            l_ref[:, h:h + 1] = (alpha * l_ref[:, h:h + 1]
                                 + jnp.sum(p, axis=-1, keepdims=True))
            acc_ref[:, sl] = (alpha * acc_ref[:, sl]
                              + jnp.dot(p.astype(vh.dtype), vh,
                                        preferred_element_type=jnp.float32))
            m_ref[:, h:h + 1] = m_new

    @pl.when(ki < qi)               # strictly below diagonal: no mask work at all
    def _below():
        attend(False)

    @pl.when(ki == qi)              # diagonal block: mask, then finalize this q block
    def _diag():
        attend(True)
        inv_l = pl.reciprocal(l_ref[...], approx=False)      # EUP, exact
        acc = acc_ref[...]
        for h in range(n_head):
            sl = slice(h * hs, (h + 1) * hs)
            o_ref[0, :, sl] = (acc[:, sl] * inv_l[:, h:h + 1]).astype(o_ref.dtype)
    # ki > qi: fully skipped; KV index_map clamp below means no DMA is issued either.


def pallas_flash_attention(qkv, n_head, *, t_target=256):
    """qkv: (B, T, 3C) fused projection -> (B, T, C) attention output (heads packed
    along C, i.e. exactly the reference y.transpose(1,2).reshape(B,T,C) layout)."""
    B, T, C3 = qkv.shape
    C = C3 // 3
    assert C % n_head == 0
    hs = C // n_head

    tq, T_pad = _choose_tile(T, t_target, 8, min_tile=128)
    if T_pad != T:
        qkv = jnp.pad(qkv, ((0, 0), (0, T_pad - T), (0, 0)))   # zero pad: causally safe
    tk = tq
    assert tq == tk  # causal-skip / diagonal-mask logic assumes square tiles
    nq = T_pad // tq
    nk = T_pad // tk

    dtype = qkv.dtype
    itemsize = jnp.dtype(dtype).itemsize
    kernel = functools.partial(_flash_attention_kernel, n_head=n_head,
                               scale=1.0 / math.sqrt(hs))

    if C % 128 == 0:
        # q/k/v selected straight out of the fused qkv via column-block index_maps
        # (block width C, block index 0/1/2) -> no wrapper slice copies.
        # KV block index clamped to min(ki, qi): skipped above-diagonal steps reuse
        # the resident block, so Pallas issues no dead K/V DMAs.
        q_spec = pl.BlockSpec((1, tq, C), lambda b, qi, ki: (b, qi, 0))
        k_spec = pl.BlockSpec((1, tk, C), lambda b, qi, ki: (b, jnp.minimum(ki, qi), 1))
        v_spec = pl.BlockSpec((1, tk, C), lambda b, qi, ki: (b, jnp.minimum(ki, qi), 2))
        operands = (qkv, qkv, qkv)
    else:
        # TODO(synk): C not a multiple of 128 -> lane-aligned column blocks of the fused
        # qkv are not expressible; fall back to materialized q/k/v slices.
        q = qkv[:, :, :C]
        k = qkv[:, :, C:2 * C]
        v = qkv[:, :, 2 * C:]
        q_spec = pl.BlockSpec((1, tq, C), lambda b, qi, ki: (b, qi, 0))
        k_spec = pl.BlockSpec((1, tk, C), lambda b, qi, ki: (b, jnp.minimum(ki, qi), 0))
        v_spec = pl.BlockSpec((1, tk, C), lambda b, qi, ki: (b, jnp.minimum(ki, qi), 0))
        operands = (q, k, v)

    block_bytes = itemsize * (2 * tq * C + 2 * tk * C)                 # q, out, k, v
    scratch_bytes = tq * C * itemsize + 2 * tq * n_head * 4 + tq * C * 4

    out = pl.pallas_call(
        kernel,
        out_shape=jax.ShapeDtypeStruct((B, T_pad, C), dtype),
        grid=(B, nq, nk),
        in_specs=[q_spec, k_spec, v_spec],
        out_specs=pl.BlockSpec((1, tq, C), lambda b, qi, ki: (b, qi, 0)),
        scratch_shapes=[
            pltpu.VMEM((tq, C), dtype),              # q, pre-scaled once per (b, qi)
            pltpu.VMEM((tq, n_head), jnp.float32),   # running max  m
            pltpu.VMEM((tq, n_head), jnp.float32),   # running sum  l
            pltpu.VMEM((tq, C), jnp.float32),        # output accumulator
        ],
        compiler_params=pltpu.CompilerParams(
            dimension_semantics=("parallel", "parallel", "arbitrary"),
            vmem_limit_bytes=_vmem_limit_bytes(block_bytes, scratch_bytes=scratch_bytes),
        ),
    )(*operands)

    if T_pad != T:
        out = out[:, :T, :]
    return out


# ----------------------------------------------------------------------------
# Full forward (matches PyTorch CasualSelfAttention.forward) — no transposes.
# ----------------------------------------------------------------------------
def causal_self_attention(x, params, n_head):
    B, T, C = x.shape
    qkv = pallas_linear(x.reshape(B * T, C), params["w_attn"], params["b_attn"])
    qkv = qkv.reshape(B, T, 3 * C)
    y = pallas_flash_attention(qkv, n_head)          # (B, T, C), lane-dense
    y = pallas_linear(y.reshape(B * T, C), params["w_proj"], params["b_proj"])
    return y.reshape(B, T, C)


# ----------------------------------------------------------------------------
# Pure-JAX reference (for correctness check)
# ----------------------------------------------------------------------------
def reference(x, params, n_head):
    B, T, C = x.shape
    hs = C // n_head
    qkv = x.reshape(B * T, C) @ params["w_attn"] + params["b_attn"]
    qkv = qkv.reshape(B, T, 3 * C)
    q, k, v = jnp.split(qkv, 3, axis=2)
    q = q.reshape(B, T, n_head, hs).transpose(0, 2, 1, 3)
    k = k.reshape(B, T, n_head, hs).transpose(0, 2, 1, 3)
    v = v.reshape(B, T, n_head, hs).transpose(0, 2, 1, 3)
    s = jnp.einsum("bhqd,bhkd->bhqk", q, k) / math.sqrt(hs)
    mask = jnp.tril(jnp.ones((T, T), dtype=bool))
    s = jnp.where(mask[None, None], s, -1e30)
    p = jax.nn.softmax(s, axis=-1)
    y = jnp.einsum("bhqk,bhkd->bhqd", p, v)
    y = y.transpose(0, 2, 1, 3).reshape(B * T, C)
    y = y @ params["w_proj"] + params["b_proj"]
    return y.reshape(B, T, C)


# ----------------------------------------------------------------------------
# Main
# ----------------------------------------------------------------------------
if __name__ == "__main__":
    # small shapes; C is a multiple of 128 so the fused-qkv index_map path is used.
    B, T, C, n_head = 2, 8, 128, 4

    key = jax.random.PRNGKey(0)
    kx, k1, k2, k3, k4 = jax.random.split(key, 5)

    x = jax.random.normal(kx, (B, T, C), dtype=jnp.float32)
    params = {
        "w_attn": 0.02 * jax.random.normal(k1, (C, 3 * C), dtype=jnp.float32),
        "b_attn": 0.02 * jax.random.normal(k2, (3 * C,), dtype=jnp.float32),
        "w_proj": 0.02 * jax.random.normal(k3, (C, C), dtype=jnp.float32),
        "b_proj": 0.02 * jax.random.normal(k4, (C,), dtype=jnp.float32),
    }

    y = causal_self_attention(x, params, n_head)
    y = jax.block_until_ready(y)

    y_ref = reference(x, params, n_head)
    assert y.shape == (B, T, C)
    assert jnp.allclose(y, y_ref, atol=1e-4, rtol=1e-4), "mismatch vs reference"

    print("KERNEL_OK")
</pallas_src>

<mosaic_0001>
module attributes {stable_mosaic.version = 11 : i64} {
  func.func @_linear_full_k_kernel(%arg0: i32, %arg1: i32, %arg2: memref<16x128xf32, #tpu.memory_space<vmem>>, %arg3: memref<128x384xf32, #tpu.memory_space<vmem>>, %arg4: memref<1x384xf32, #tpu.memory_space<vmem>>, %arg5: memref<16x384xf32, #tpu.memory_space<vmem>>) attributes {dimension_semantics = [#tpu.dimension_semantics<parallel>, #tpu.dimension_semantics<parallel>], iteration_bounds = array<i64: 1, 1>, scalar_prefetch = 0 : i64, scratch_operands = 0 : i64, tpu.core_type = #tpu.core_type<tc>, window_params = [{transform_indices = @transform_0, window_bounds = array<i64: 16, 128>}, {transform_indices = @transform_1, window_bounds = array<i64: 128, 384>}, {transform_indices = @transform_2, window_bounds = array<i64: 1, 384>}, {transform_indices = @transform_3, window_bounds = array<i64: 16, 384>}]} {
    %c0 = arith.constant 0 : index
    %c0_0 = arith.constant 0 : index
    %0 = vector.load %arg2[%c0, %c0_0] : memref<16x128xf32, #tpu.memory_space<vmem>>, vector<16x128xf32>
    %c0_1 = arith.constant 0 : index
    %c0_2 = arith.constant 0 : index
    %1 = vector.load %arg3[%c0_1, %c0_2] : memref<128x384xf32, #tpu.memory_space<vmem>>, vector<128x384xf32>
    %cst = arith.constant dense<0.000000e+00> : vector<16x384xf32>
    %2 = tpu.matmul %0, %1, %cst {dimension_numbers = #tpu.dot_dimension_numbers<[1], [0], [0], [1], [0, 0, 1, 1], [], []>} : vector<16x128xf32>, vector<128x384xf32>, vector<16x384xf32> -> vector<16x384xf32>
    %c0_3 = arith.constant 0 : index
    %c0_4 = arith.constant 0 : index
    %3 = vector.load %arg4[%c0_3, %c0_4] : memref<1x384xf32, #tpu.memory_space<vmem>>, vector<1x384xf32>
    %4 = vector.broadcast %3 : vector<1x384xf32> to vector<16x384xf32>
    %5 = arith.addf %2, %4 : vector<16x384xf32>
    %c0_5 = arith.constant 0 : index
    %c0_6 = arith.constant 0 : index
    %6 = vector.load %arg5[%c0_5, %c0_6] : memref<16x384xf32, #tpu.memory_space<vmem>>, vector<16x384xf32>
    tpu.vector_store %arg5[%c0_5, %c0_6], %5 {strides = array<i32>} : memref<16x384xf32, #tpu.memory_space<vmem>>, vector<16x384xf32>,
    return
  }
  func.func @transform_0(%arg0: i32, %arg1: i32) -> (i32, i32) {
    %c0_i32 = arith.constant 0 : i32
    %c0_i32_0 = arith.constant 0 : i32
    return %arg0, %c0_i32 : i32, i32
  }
  func.func @transform_1(%arg0: i32, %arg1: i32) -> (i32, i32) {
    %c0_i32 = arith.constant 0 : i32
    %c0_i32_0 = arith.constant 0 : i32
    return %c0_i32, %arg1 : i32, i32
  }
  func.func @transform_2(%arg0: i32, %arg1: i32) -> (i32, i32) {
    %c0_i32 = arith.constant 0 : i32
    %c0_i32_0 = arith.constant 0 : i32
    return %c0_i32, %arg1 : i32, i32
  }
  func.func @transform_3(%arg0: i32, %arg1: i32) -> (i32, i32) {
    %c0_i32 = arith.constant 0 : i32
    return %arg0, %arg1 : i32, i32
  }
}

</mosaic_0001>

<bundles_post_ra>
// kernel: tpu_custom_call.1
= control target key start
LH: loop header
LB: loop body
LE: loop exit
PB: predicated region body
PF: predicated region fallthrough
CT: control target
= control target key end

     0   :  { %8 = vsyncpa [#allocation3], 0  ;;  %s461_s0 = inlined_call_operand.hbm [shape: f32[16,128], index: 0, kind: input, shape index: {}]   ;;  %s462_s1 = inlined_call_operand.hbm [shape: f32[128,384], index: 1, kind: input, shape index: {}]   ;;  %s463_s2 = inlined_call_operand.vmem [shape: f32[1,384], index: 2, kind: input, shape index: {}]   ;;  %s464_s3 = inlined_call_operand.hbm [shape: f32[16,384], index: 3, kind: output, shape index: {}]  }
   0x1   :  { %9 = vsyncpa [#allocation6], 0 }
   0x2   :  { %10 = vsyncpa [#allocation4], 0  ;;  %s413_s12 = smov [#allocation2]  }
   0x3   :  { %s16_s13 = sshll.u32 %s413_s12, 4  ;;  %s17_s13 = int_to_ptr.vmem [resolvable:$true] %s16_s13 }
   0x4   :  { %s355_s14 = scalar_lea.vmem %s17_s13, 256  ;;  %p360_p1 = scmp.lt.s32.totalorder %s17_s13, %s17_s13 }
   0x5   :  { %p356_p0 = scmp.ne.s32.totalorder %s17_s13, %s355_s14  ;;  %p361_p2 = scmp.lt.s32.totalorder %s355_s14, %s355_s14 }
   0x7   :  { %p362_p3 = por %p361_p2, %p360_p1 }
   0x9   :  { %p363_p4 = pnand %p362_p3, %p356_p0 }
   0xb   :  { %366 = shalt.err (!%p363_p4)
}
   0xc   :  { %s414_s15 = smov 128   ;;  %s415_s16 = smov 8  }
   0xd   :  { %22 = dma.hbm_to_vmem [thread:$0]  %s461_s0, 256, %s17_s13, [#allocation3], %s414_s15, %s414_s15, %s415_s16  }
   0xe   :  { %s416_s19 = smov [#allocation5]  }
   0xf   :  { %s28_s20 = sshll.u32 %s416_s19, 4  ;;  %s29_s20 = int_to_ptr.vmem [resolvable:$true] %s28_s20 }
  0x10   :  { %s375_s21 = scalar_lea.vmem %s29_s20, 6144  ;;  %p380_p6 = scmp.lt.s32.totalorder %s29_s20, %s29_s20 }
  0x11   :  { %p376_p5 = scmp.ne.s32.totalorder %s29_s20, %s375_s21  ;;  %p381_p7 = scmp.lt.s32.totalorder %s375_s21, %s375_s21 }
  0x13   :  { %p382_p8 = por %p381_p7, %p380_p6 }
  0x15   :  { %p383_p9 = pnand %p382_p8, %p376_p5 }
  0x17   :  { %386 = shalt.err (!%p383_p9)
}
  0x18   :  { %s417_s22 = smov 384   ;;  %s418_s23 = smov 24  }
  0x19   :  { %34 = dma.hbm_to_vmem [thread:$0]  %s462_s1, 6144, %s29_s20, [#allocation6], %s417_s22, %s417_s22, %s418_s23  }
  0x1a   :  { %407 = dma.done.wait [#allocation3], 256  }
  0x1b   :  { %408 = vsyncadd [#allocation3], 4294967040 }
  0x1c   :  { %409 = dma.done.wait [#allocation6], 6144  }
  0x1d   :  { %410 = vsyncadd [#allocation6], 4294961152  ;;  %v419_v0 = vmov 0.0   ;;  %v91_v1 = vld [vmem:[#allocation5 + $0x170] sm:$0xff]  ;;  %v90_v2 = vld [vmem:[#allocation5 + $0x168] sm:$0xff]  ;;  %v95_v51 = vlaneseq  ;;  %s420_s26 = smov [#allocation7]  }
  0x1e   :  { %174 = vmatprep.mubr.f32.mxu0 %v419_v0  ;;  %v88_v3 = vld [vmem:[#allocation5 + $0x158] sm:$0xff]  ;;  %110 = vmatprep.subr.mxu0 %v91_v1  ;;  %v87_v5 = vld [vmem:[#allocation5 + $0x150] sm:$0xff]  ;;  %v85_v6 = vld [vmem:[#allocation5 + $0x140] sm:$0xff]  ;;  %s273_s27 = sshll.u32 %s420_s26, 4  ;;  %s274_s27 = int_to_ptr.vmem [resolvable:$true] %s273_s27 }
  0x1f   :  { %v92_v4 = vld [vmem:[#allocation5 + $0x178] sm:$0xff]  ;;  %111 = vmatpush1.msra.mxu0 %v90_v2  ;;  %v89_v7 = vld [vmem:[#allocation5 + $0x160] sm:$0xff]  ;;  %v86_v9 = vld [vmem:[#allocation5 + $0x148] sm:$0xff]  ;;  %v96_v52 = vshrl.u32 %v95_v51, 7  ;;  %p392_p11 = scmp.lt.s32.totalorder %s274_s27, %s274_s27 }
  0x20   :  { %304 = vmatprep.subr.mxu1 %v92_v4  ;;  %112 = vmatprep.subr.mxu0 %v88_v3  ;;  %v84_v8 = vld [vmem:[#allocation5 + $0x138] sm:$0xff]  ;;  %v82_v10 = vld [vmem:[#allocation5 + $0x128] sm:$0xff]  ;;  %v81_v11 = vld [vmem:[#allocation5 + $0x120] sm:$0xff] }
  0x21   :  { %305 = vmatpush3.msra.mxu1 %v92_v4  ;;  %113 = vmatpush1.msra.mxu0 %v87_v5  ;;  %v83_v12 = vld [vmem:[#allocation5 + $0x130] sm:$0xff]  ;;  %v78_v14 = vld [vmem:[#allocation5 + $0x108] sm:$0xff]  ;;  %v80_v15 = vld [vmem:[#allocation5 + $0x118] sm:$0xff]  ;;  %v97_v53 = vsub.s32 0, %v96_v52  ;;  %v101_v55 = vsub.s32 1, %v96_v52  ;;  %v105_v56 = vsub.s32 2, %v96_v52 }
  0x22   :  { %306 = vmatprep.subr.mxu1 %v89_v7  ;;  %114 = vmatprep.subr.mxu0 %v85_v6  ;;  %v79_v13 = vld [vmem:[#allocation5 + $0x110] sm:$0xff]  ;;  %v76_v16 = vld [vmem:[#allocation5 + $0xf8] sm:$0xff]  ;;  %v77_v18 = vld [vmem:[#allocation5 + $0x100] sm:$0xff] }
  0x23   :  { %307 = vmatpush3.msra.mxu1 %v89_v7  ;;  %115 = vmatpush1.msra.mxu0 %v84_v8  ;;  %v75_v17 = vld [vmem:[#allocation5 + $0xf0] sm:$0xff]  ;;  %v73_v19 = vld [vmem:[#allocation5 + $0xe0] sm:$0xff]  ;;  %v72_v20 = vld [vmem:[#allocation5 + $0xd8] sm:$0xff] }
  0x24   :  { %308 = vmatprep.subr.mxu1 %v86_v9  ;;  %116 = vmatprep.subr.mxu0 %v82_v10  ;;  %v74_v21 = vld [vmem:[#allocation5 + $0xe8] sm:$0xff]  ;;  %v69_v23 = vld [vmem:[#allocation5 + $0xc0] sm:$0xff]  ;;  %v71_v24 = vld [vmem:[#allocation5 + $0xd0] sm:$0xff] }
  0x25   :  { %309 = vmatpush3.msra.mxu1 %v86_v9  ;;  %117 = vmatpush1.msra.mxu0 %v81_v11  ;;  %v70_v22 = vld [vmem:[#allocation5 + $0xc8] sm:$0xff]  ;;  %v67_v25 = vld [vmem:[#allocation5 + $0xb0] sm:$0xff]  ;;  %v68_v27 = vld [vmem:[#allocation5 + $0xb8] sm:$0xff] }
  0x26   :  { %310 = vmatprep.subr.mxu1 %v83_v12  ;;  %118 = vmatprep.subr.mxu0 %v79_v13  ;;  %v66_v26 = vld [vmem:[#allocation5 + $0xa8] sm:$0xff]  ;;  %v64_v28 = vld [vmem:[#allocation5 + $0x98] sm:$0xff]  ;;  %v63_v29 = vld [vmem:[#allocation5 + $0x90] sm:$0xff] }
  0x27   :  { %311 = vmatpush3.msra.mxu1 %v83_v12  ;;  %119 = vmatpush1.msra.mxu0 %v78_v14  ;;  %v65_v30 = vld [vmem:[#allocation5 + $0xa0] sm:$0xff]  ;;  %v60_v32 = vld [vmem:[#allocation5 + $0x78] sm:$0xff]  ;;  %v62_v33 = vld [vmem:[#allocation5 + $0x88] sm:$0xff] }
  0x28   :  { %312 = vmatprep.subr.mxu1 %v80_v15  ;;  %120 = vmatprep.subr.mxu0 %v76_v16  ;;  %v61_v31 = vld [vmem:[#allocation5 + $0x80] sm:$0xff]  ;;  %v58_v34 = vld [vmem:[#allocation5 + $0x68] sm:$0xff]  ;;  %v59_v36 = vld [vmem:[#allocation5 + $0x70] sm:$0xff] }
  0x29   :  { %313 = vmatpush3.msra.mxu1 %v80_v15  ;;  %121 = vmatpush1.msra.mxu0 %v75_v17  ;;  %v57_v35 = vld [vmem:[#allocation5 + $0x60] sm:$0xff]  ;;  %v55_v37 = vld [vmem:[#allocation5 + $0x50] sm:$0xff]  ;;  %v54_v38 = vld [vmem:[#allocation5 + $0x48] sm:$0xff] }
  0x2a   :  { %314 = vmatprep.subr.mxu1 %v77_v18  ;;  %122 = vmatprep.subr.mxu0 %v73_v19  ;;  %v56_v39 = vld [vmem:[#allocation5 + $0x58] sm:$0xff]  ;;  %v51_v41 = vld [vmem:[#allocation5 + $0x30] sm:$0xff]  ;;  %v53_v42 = vld [vmem:[#allocation5 + $0x40] sm:$0xff] }
  0x2b   :  { %315 = vmatpush3.msra.mxu1 %v77_v18  ;;  %123 = vmatpush1.msra.mxu0 %v72_v20  ;;  %v52_v40 = vld [vmem:[#allocation5 + $0x38] sm:$0xff]  ;;  %v49_v43 = vld [vmem:[#allocation5 + $0x20] sm:$0xff]  ;;  %v50_v45 = vld [vmem:[#allocation5 + $0x28] sm:$0xff] }
  0x2c   :  { %316 = vmatprep.subr.mxu1 %v74_v21  ;;  %124 = vmatprep.subr.mxu0 %v70_v22  ;;  %v48_v44 = vld [vmem:[#allocation5 + $0x18] sm:$0xff]  ;;  %v46_v46 = vld [vmem:[#allocation5 + $0x8] sm:$0xff]  ;;  %v45_v47 = vld [vmem:[#allocation5] sm:$0xff] }
  0x2d   :  { %317 = vmatpush3.msra.mxu1 %v74_v21  ;;  %125 = vmatpush1.msra.mxu0 %v69_v23  ;;  %v47_v48 = vld [vmem:[#allocation5 + $0x10] sm:$0xff]  ;;  %v44_v50 = vld [vmem:[#allocation2 + $0x8] sm:$0xff] }
  0x2e   :  { %318 = vmatprep.subr.mxu1 %v71_v24  ;;  %126 = vmatprep.subr.mxu0 %v67_v25  ;;  %v43_v49 = vld [vmem:[#allocation2] sm:$0xff] }
  0x2f   :  { %319 = vmatpush3.msra.mxu1 %v71_v24  ;;  %127 = vmatpush1.msra.mxu0 %v66_v26  ;;  %v93_v54 = vld [vmem:[%s463_s2] sm:$0x7]  ;;  %s387_s2 = scalar_lea.vmem %s274_s27, 768 }
  0x30   :  { %320 = vmatprep.subr.mxu1 %v68_v27  ;;  %128 = vmatprep.subr.mxu0 %v64_v28  ;;  %v98_v57 = vrot.slane %v93_v54, %v97_v53  ;;  %v102_v58 = vrot.slane %v93_v54, %v101_v55  ;;  %v106_v59 = vrot.slane %v93_v54, %v105_v56  ;;  %p388_p10 = scmp.ne.s32.totalorder %s274_s27, %s387_s2  ;;  %p393_p12 = scmp.lt.s32.totalorder %s387_s2, %s387_s2 }
  0x31   :  { %321 = vmatpush3.msra.mxu1 %v68_v27  ;;  %129 = vmatpush1.msra.mxu0 %v63_v29 }
  0x32   :  { %322 = vmatprep.subr.mxu1 %v65_v30  ;;  %130 = vmatprep.subr.mxu0 %v61_v31  ;;  %p394_p13 = por %p393_p12, %p392_p11 }
  0x33   :  { %323 = vmatpush3.msra.mxu1 %v65_v30  ;;  %131 = vmatpush1.msra.mxu0 %v60_v32 }
  0x34   :  { %324 = vmatprep.subr.mxu1 %v62_v33  ;;  %132 = vmatprep.subr.mxu0 %v58_v34  ;;  %p395_p0 = pnand %p394_p13, %p388_p10 }
  0x35   :  { %325 = vmatpush3.msra.mxu1 %v62_v33  ;;  %133 = vmatpush1.msra.mxu0 %v57_v35 }
  0x36   :  { %326 = vmatprep.subr.mxu1 %v59_v36  ;;  %134 = vmatprep.subr.mxu0 %v55_v37 }
  0x37   :  { %327 = vmatpush3.msra.mxu1 %v59_v36  ;;  %135 = vmatpush1.msra.mxu0 %v54_v38 }
  0x38   :  { %328 = vmatprep.subr.mxu1 %v56_v39  ;;  %136 = vmatprep.subr.mxu0 %v52_v40 }
  0x39   :  { %329 = vmatpush3.msra.mxu1 %v56_v39  ;;  %137 = vmatpush1.msra.mxu0 %v51_v41 }
  0x3a   :  { %330 = vmatprep.subr.mxu1 %v53_v42  ;;  %138 = vmatprep.subr.mxu0 %v49_v43 }
  0x3b   :  { %331 = vmatpush3.msra.mxu1 %v53_v42  ;;  %139 = vmatpush1.msra.mxu0 %v48_v44 }
  0x3c   :  { %332 = vmatprep.subr.mxu1 %v50_v45  ;;  %140 = vmatprep.subr.mxu0 %v46_v46 }
  0x3d   :  { %333 = vmatpush3.msra.mxu1 %v50_v45  ;;  %141 = vmatpush1.msra.mxu0 %v45_v47 }
  0x3e   :  { %334 = vmatprep.subr.mxu1 %v47_v48  ;;  %175 = vmatmul.mubr.f32.vlgmr.msra.gmra.mxu0 %v43_v49 }
  0x3f   :  { %335 = vmatpush3.msra.mxu1 %v47_v48  ;;  %336 = vmatprep.mubr.f32.mxu1 %v43_v49 }
  0x40   :  { %180 = vmatprep.mubr.f32.mxu0 %v419_v0  ;;  %337 = vmatmul.mubr.f32.vlgmr.msra.gmra.mxu1 %v44_v50 }
  0x42   :  { %181 = vmatmul.mubr.f32.gmra.mxu0 %v44_v50 }
  0xfe   :  { %v176_v60 = vpop.f32.mrf.mxu0 }
  0xff   :  { %v177_v61 = vadd.f32 %v176_v60, %v98_v57 }
 0x100   :  { %v178_v62 = vpop.f32.mrf.mxu0  ;;  %v338_v63 = vpop.f32.mrf.mxu1 }
 0x101   :  { %262 = vst [vmem:[#allocation7] sm:$0xff] %v177_v61  ;;  %v179_v0 = vadd.f32 %v178_v62, %v102_v58  ;;  %v259_v1 = vadd.f32 %v338_v63, %v106_v59 }
 0x102   :  { %v182_v2 = vpop.f32.mrf.mxu0  ;;  %v253_v3 = vpop.f32.mrf.mxu1 }
 0x103   :  { %263 = vst [vmem:[#allocation7 + $0x8] sm:$0xff] %v179_v0  ;;  %267 = vst [vmem:[#allocation7 + $0x28] sm:$0xff] %v259_v1  ;;  %v183_v4 = vadd.f32 %v182_v2, %v98_v57  ;;  %v254_v5 = vadd.f32 %v253_v3, %v106_v59 }
 0x104   :  { %v184_v6 = vpop.f32.mrf.mxu0 }
 0x105   :  { %265 = vst [vmem:[#allocation7 + $0x18] sm:$0xff] %v183_v4  ;;  %264 = vst [vmem:[#allocation7 + $0x10] sm:$0xff] %v254_v5  ;;  %v185_v7 = vadd.f32 %v184_v6, %v102_v58 }
 0x107   :  { %266 = vst [vmem:[#allocation7 + $0x20] sm:$0xff] %v185_v7 }
 0x108   :  { %398 = shalt.err (!%p395_p0)
}
 0x109   :  { %279 = dma.vmem_to_hbm [thread:$0]  %s274_s27, 768, %s464_s3, [#allocation4], %s417_s22, %s417_s22, %s418_s23  }
 0x10a   :  { %411 = dma.done.wait [#allocation4], 768  }
 0x10b   :  { %412 = vsyncadd [#allocation4], 4294966528 }
 0x10c   :  { %283 = vsyncpa [#allocation3], 1 }
 0x10d   :  { %284 = vsyncpa [#allocation6], 1 }
 0x10e   :  { %285 = vsyncpa [#allocation4], 1 }

</bundles_post_ra>
